<compile_context>
chip_gen: v7x
topology: tpu7x:2x2x1
jax: 0.10.0
libtpu: 0.0.40
codegen_flags: <defaults>
</compile_context>

<pallas_src>
import functools

import jax
import jax.numpy as jnp
from jax import lax
from jax.experimental import pallas as pl
from jax.experimental.pallas import tpu as pltpu

_LANES = 128
_SUBLANES = 8
_MAX_TILE_ROWS = 2048   # (2048, 128) f32 tile = 1 MiB per input per buffer


# ----------------------------------------------------------------------------
# Static tiling plan / lane-dense view helpers
# ----------------------------------------------------------------------------
def _cdiv(a, b):
    return -(-a // b)


def _plan(n):
    """Static plan for n scalar elements -> (view_rows, tile_rows, num_tiles)."""
    rows = _cdiv(n, _LANES)
    view_rows = max(rows, _SUBLANES)                     # at least one (8,128) tile
    tile_rows = min(_MAX_TILE_ROWS, (view_rows // _SUBLANES) * _SUBLANES)
    num_tiles = _cdiv(view_rows, tile_rows)
    return view_rows, tile_rows, num_tiles


def _call_common(n):
    view_rows, tile_rows, num_tiles = _plan(n)
    rows_full = n // _LANES                              # fully valid rows
    lane_tail = n % _LANES                               # valid lanes in last row
    need_mask = (num_tiles * tile_rows * _LANES) != n    # any invalid slots?
    return view_rows, tile_rows, num_tiles, rows_full, lane_tail, need_mask


def _as_lane_rows(arr, view_rows):
    """Present arr as a lane-dense (view_rows, 128) f32 view.

    If arr.size is already a multiple of 128 (and >= 1024) this is a pure
    ravel+reshape — no extra HBM pass.  Otherwise a minimal zero-pad brings the
    flat array up to view_rows*128 elements.
    """
    flat = jnp.ravel(arr).astype(jnp.float32)
    n = flat.shape[0]
    padded = view_rows * _LANES
    if padded != n:
        # TODO(synk): pltpu.CompilerParams(allow_input_fusion=...) could fold
        # this pad into the pallas_call input DMA and remove the last copy.
        flat = jnp.pad(flat, (0, padded - n))
    return flat.reshape(view_rows, _LANES)


# ----------------------------------------------------------------------------
# In-kernel helpers
# ----------------------------------------------------------------------------
def _fold_rows(v, tile_rows):
    """(tile_rows, 128) -> (8, 128) partial sum: pure vreg adds (no XLU)."""
    return v.reshape(tile_rows // _SUBLANES, _SUBLANES, _LANES).sum(axis=0)


def _tail_valid_mask(t, tile_rows, rows_full, lane_tail):
    """Validity mask for the ragged tail tile (int32-safe row/lane compares)."""
    row = t * tile_rows + lax.broadcasted_iota(jnp.int32, (tile_rows, _LANES), 0)
    if lane_tail == 0:
        return row < rows_full
    lane = lax.broadcasted_iota(jnp.int32, (tile_rows, _LANES), 1)
    return (row < rows_full) | ((row == rows_full) & (lane < lane_tail))


def _accumulate(out_ref, loss, t, *, tile_rows, rows_full, lane_tail, need_mask):
    """Reduce this tile into the resident (8,128) accumulator.

    The mask work is gated behind a runtime scalar so only the final ragged
    tile pays for it; steady-state tiles do the bare fold.
    """
    if not need_mask:
        out_ref[...] += _fold_rows(loss, tile_rows)
        return

    is_tail = (t + 1) * tile_rows > rows_full

    @pl.when(jnp.logical_not(is_tail))
    def _():
        out_ref[...] += _fold_rows(loss, tile_rows)

    @pl.when(is_tail)
    def _():
        mask = _tail_valid_mask(t, tile_rows, rows_full, lane_tail)
        out_ref[...] += _fold_rows(jnp.where(mask, loss, 0.0), tile_rows)


def _int_pow(base, gama):
    if isinstance(gama, int) and gama >= 1:
        out = base
        for _ in range(gama - 1):            # avoid EUP pow for integer gama
            out = out * base
        return out
    if isinstance(gama, int) and gama == 0:
        return jnp.ones_like(base)
    # Non-integer gama: float pow (NaN for negative bases, same as reference).
    return base ** gama


# ----------------------------------------------------------------------------
# Kernel 1: binary_cross_entropy_with_logits (sum of per-element losses)
# ----------------------------------------------------------------------------
def _bce_sum_kernel(x_ref, y_ref, out_ref, *, tile_rows, rows_full, lane_tail,
                    need_mask):
    t = pl.program_id(0)

    @pl.when(t == 0)
    def _():
        out_ref[...] = jnp.zeros_like(out_ref)

    x = x_ref[...]                                       # (tile_rows, 128) f32
    y = y_ref[...]
    # stable BCE-with-logits:  max(x,0) - x*y + log(1 + exp(-|x|))
    loss = jnp.maximum(x, 0.0) - x * y + jnp.log1p(jnp.exp(-jnp.abs(x)))
    _accumulate(out_ref, loss, t, tile_rows=tile_rows, rows_full=rows_full,
                lane_tail=lane_tail, need_mask=need_mask)


# ----------------------------------------------------------------------------
# Kernel 2: focal AUC loss, one fused elementwise expression + one sum
# ----------------------------------------------------------------------------
def _focal_auc_sum_kernel(x_ref, y_ref, s_ref, out_ref, *, tile_rows, rows_full,
                          lane_tail, need_mask, gama, j):
    t = pl.program_id(0)

    @pl.when(t == 0)
    def _():
        out_ref[...] = jnp.zeros_like(out_ref)

    # Pre-derived scalars (SMEM table, computed once in the wrapper):
    #   [a, b, 1-p, p, -2*alpha*(1-p), 2*alpha*p, p*(1-p)*(2*alpha*m - alpha^2)]
    a = s_ref[0]
    b = s_ref[1]
    c_pos = s_ref[2]
    c_neg = s_ref[3]
    t_pos = s_ref[4]
    t_neg = s_ref[5]
    k1 = s_ref[6]

    yp = jax.nn.sigmoid(x_ref[...])                      # (tile_rows, 128)
    yt = y_ref[...]

    da = yp - a
    db = yp - b
    base1 = 1.0 - j * da                                 # 1 - j*(yp - a)
    base2 = 1.0 + j * db                                 # 1 - j*(b  - yp)
    p1 = _int_pow(base1, gama)
    p2 = _int_pow(base2, gama)

    # mean(fused) == L_AUC of the reference (all scalars factored inside):
    #   fused = pos*p1*[(1-p)*da^2 - 2a(1-p)*yp + K1] + neg*p2*[p*db^2 + 2ap*yp + K1]
    pos_term = p1 * (c_pos * (da * da) + t_pos * yp + k1)
    neg_term = p2 * (c_neg * (db * db) + t_neg * yp + k1)
    # Exact-equality masks as selects (reference zeroes BOTH for non-binary y).
    fused = (jnp.where(yt == 1.0, pos_term, 0.0)
             + jnp.where(yt == 0.0, neg_term, 0.0))

    _accumulate(out_ref, fused, t, tile_rows=tile_rows, rows_full=rows_full,
                lane_tail=lane_tail, need_mask=need_mask)


# ----------------------------------------------------------------------------
# pallas_call wrappers
# ----------------------------------------------------------------------------
def _bce_call(y_pred, y_true):
    n = int(y_pred.size)
    view_rows, tile_rows, num_tiles, rows_full, lane_tail, need_mask = _call_common(n)
    x2 = _as_lane_rows(y_pred, view_rows)
    y2 = _as_lane_rows(y_true, view_rows)

    kern = functools.partial(_bce_sum_kernel, tile_rows=tile_rows,
                             rows_full=rows_full, lane_tail=lane_tail,
                             need_mask=need_mask)
    part = pl.pallas_call(
        kern,
        out_shape=jax.ShapeDtypeStruct((_SUBLANES, _LANES), jnp.float32),
        grid=(num_tiles,),
        in_specs=[
            pl.BlockSpec((tile_rows, _LANES), lambda t: (t, 0)),
            pl.BlockSpec((tile_rows, _LANES), lambda t: (t, 0)),
        ],
        out_specs=pl.BlockSpec((_SUBLANES, _LANES), lambda t: (0, 0)),
        compiler_params=pltpu.CompilerParams(
            dimension_semantics=("arbitrary",)),
    )(x2, y2)
    return jnp.sum(part) / jnp.float32(n)


def _auc_call(y_pred, y_true, a, b, alpha, p, *, margin, gama, j):
    n = int(y_pred.size)
    view_rows, tile_rows, num_tiles, rows_full, lane_tail, need_mask = _call_common(n)
    x2 = _as_lane_rows(y_pred, view_rows)
    y2 = _as_lane_rows(y_true, view_rows)

    # All derived scalars precomputed once (tiny XLA ops, off the hot loop).
    a_ = jnp.asarray(a, jnp.float32).reshape(())
    b_ = jnp.asarray(b, jnp.float32).reshape(())
    al = jnp.asarray(alpha, jnp.float32).reshape(())
    p_ = jnp.asarray(p, jnp.float32).reshape(())
    one_m_p = 1.0 - p_
    k1 = p_ * one_m_p * (2.0 * al * float(margin) - al * al)
    scal = jnp.stack([a_, b_, one_m_p, p_,
                      -2.0 * al * one_m_p, 2.0 * al * p_,
                      k1, jnp.float32(0.0)])             # (8,) f32 SMEM table

    kern = functools.partial(_focal_auc_sum_kernel, tile_rows=tile_rows,
                             rows_full=rows_full, lane_tail=lane_tail,
                             need_mask=need_mask, gama=gama, j=float(j))
    part = pl.pallas_call(
        kern,
        out_shape=jax.ShapeDtypeStruct((_SUBLANES, _LANES), jnp.float32),
        grid=(num_tiles,),
        in_specs=[
            pl.BlockSpec((tile_rows, _LANES), lambda t: (t, 0)),
            pl.BlockSpec((tile_rows, _LANES), lambda t: (t, 0)),
            pl.BlockSpec(memory_space=pltpu.MemorySpace.SMEM),
        ],
        out_specs=pl.BlockSpec((_SUBLANES, _LANES), lambda t: (0, 0)),
        compiler_params=pltpu.CompilerParams(
            dimension_semantics=("arbitrary",)),
    )(x2, y2, scal)
    return jnp.sum(part) / jnp.float32(n)


# ----------------------------------------------------------------------------
# Stateful wrapper mirroring the PyTorch module (backend flips each call).
# ----------------------------------------------------------------------------
class FocalAUCLoss:
    def __init__(self, imratio=None, margin=1, gama=1, j=0.5):
        self.margin = float(margin)
        self.gama = gama
        self.j = float(j)
        self.p = imratio
        # TODO(synk): a/b/alpha are trainable nn.Parameters in PyTorch; here
        # they are plain zero-initialized arrays (forward pass only).
        self.a = jnp.zeros((1,), jnp.float32)
        self.b = jnp.zeros((1,), jnp.float32)
        self.alpha = jnp.zeros((1,), jnp.float32)
        self.backend = 'ce'

    def __call__(self, y_pred, y_true):
        # mirrors `if len(y_pred) == 1: y_pred = y_pred.reshape(-1, 1)`
        if y_pred.shape[0] == 1:
            y_pred = y_pred.reshape(-1, 1)
        if y_true.shape[0] == 1:
            y_true = y_true.reshape(-1, 1)

        if self.backend == 'ce':
            self.backend = 'auc'
            return _bce_call(y_pred, y_true)
        else:
            self.backend = 'ce'
            if self.p is None:
                # Same formula/divisor as the PyTorch module (y_true.shape[0]);
                # computed once and cached on the object.
                self.p = (jnp.sum((y_true == 1).astype(jnp.float32))
                          / y_true.shape[0])
            return _auc_call(y_pred, y_true, self.a, self.b, self.alpha, self.p,
                             margin=self.margin, gama=self.gama, j=self.j)


# ----------------------------------------------------------------------------
# Pure-JAX references (sanity check only)
# ----------------------------------------------------------------------------
def _ref_bce(y_pred, y_true):
    x = y_pred.astype(jnp.float32)
    y = y_true.astype(jnp.float32)
    return jnp.mean(jnp.maximum(x, 0.0) - x * y + jnp.log1p(jnp.exp(-jnp.abs(x))))


def _ref_auc(y_pred, y_true, a, b, alpha, p, margin, gama, j):
    yp = jax.nn.sigmoid(y_pred.astype(jnp.float32))
    yt = y_true.astype(jnp.float32)
    pos = (yt == 1.0).astype(jnp.float32)
    neg = (yt == 0.0).astype(jnp.float32)
    p1 = (1.0 - j * (yp - a)) ** gama
    p2 = (1.0 - j * (b - yp)) ** gama
    pp = jnp.mean(p1 * pos + p2 * neg)
    return ((1.0 - p) * jnp.mean(p1 * (yp - a) ** 2 * pos)
            + p * jnp.mean(p2 * (yp - b) ** 2 * neg)
            + 2.0 * alpha * (p * (1.0 - p) * margin * pp
                             + jnp.mean(p * p2 * yp * neg
                                        - (1.0 - p) * p1 * yp * pos))
            - p * (1.0 - p) * alpha ** 2 * pp)


if __name__ == "__main__":
    key = jax.random.PRNGKey(0)
    k1, k2, k3, k4 = jax.random.split(key, 4)

    # Case 1: (N, 1) logits, N not a multiple of 128 -> exercises the gated
    # ragged-tail mask and the imratio-from-data path.
    N = 1000
    y_pred = jax.random.normal(k1, (N, 1), dtype=jnp.float32)             # logits
    y_true = (jax.random.uniform(k2, (N, 1)) > 0.7).astype(jnp.float32)   # {0,1}

    loss_fn = FocalAUCLoss(imratio=None, margin=1, gama=1, j=0.5)
    ce_loss = loss_fn(y_pred, y_true)    # 1st call -> BCE-with-logits (mean)
    auc_loss = loss_fn(y_pred, y_true)   # 2nd call -> focal AUC loss
    jax.block_until_ready((ce_loss, auc_loss))

    p_ref = jnp.sum((y_true == 1).astype(jnp.float32)) / y_true.shape[0]
    ce_ref = _ref_bce(y_pred, y_true)
    auc_ref = _ref_auc(y_pred, y_true, 0.0, 0.0, 0.0, p_ref, 1.0, 1, 0.5)
    assert jnp.allclose(ce_loss, ce_ref, rtol=1e-4, atol=1e-5), (ce_loss, ce_ref)
    assert jnp.allclose(auc_loss, auc_ref, rtol=1e-4, atol=1e-5), (auc_loss, auc_ref)

    # Case 2: lane-aligned multi-dim input (pure-reshape, no mask path),
    # gama=2 (repeated-multiply pow) and non-zero a/b/alpha/imratio.
    y_pred2 = jax.random.normal(k3, (256, 8), dtype=jnp.float32)
    y_true2 = (jax.random.uniform(k4, (256, 8)) > 0.5).astype(jnp.float32)

    loss_fn2 = FocalAUCLoss(imratio=0.3, margin=1, gama=2, j=0.5)
    loss_fn2.a = jnp.full((1,), 0.25, jnp.float32)
    loss_fn2.b = jnp.full((1,), 0.60, jnp.float32)
    loss_fn2.alpha = jnp.full((1,), 0.10, jnp.float32)
    ce2 = loss_fn2(y_pred2, y_true2)
    auc2 = loss_fn2(y_pred2, y_true2)
    jax.block_until_ready((ce2, auc2))

    ce2_ref = _ref_bce(y_pred2, y_true2)
    auc2_ref = _ref_auc(y_pred2, y_true2, 0.25, 0.60, 0.10, 0.3, 1.0, 2, 0.5)
    assert jnp.allclose(ce2, ce2_ref, rtol=1e-4, atol=1e-5), (ce2, ce2_ref)
    assert jnp.allclose(auc2, auc2_ref, rtol=1e-4, atol=1e-5), (auc2, auc2_ref)

    print("KERNEL_OK")
</pallas_src>

<mosaic_0001>
module attributes {stable_mosaic.version = 11 : i64} {
  func.func @_bce_sum_kernel(%arg0: i32, %arg1: memref<8x128xf32, #tpu.memory_space<vmem>>, %arg2: memref<8x128xf32, #tpu.memory_space<vmem>>, %arg3: memref<8x128xf32, #tpu.memory_space<vmem>>) attributes {dimension_semantics = [#tpu.dimension_semantics<arbitrary>], iteration_bounds = array<i64: 1>, scalar_prefetch = 0 : i64, scratch_operands = 0 : i64, tpu.core_type = #tpu.core_type<tc>, window_params = [{transform_indices = @transform_0, window_bounds = array<i64: 8, 128>}, {transform_indices = @transform_1, window_bounds = array<i64: 8, 128>}, {pipeline_mode = #tpu.pipeline_mode<synchronous>, transform_indices = @transform_2, window_bounds = array<i64: 8, 128>}]} {
    %c0_i32 = arith.constant 0 : i32
    %0 = arith.cmpi eq, %arg0, %c0_i32 : i32
    %1 = arith.extui %0 : i1 to i32
    %c0_i32_0 = arith.constant 0 : i32
    %2 = arith.cmpi ne, %1, %c0_i32_0 : i32
    scf.if %2 {
      %cst_7 = arith.constant 0.000000e+00 : f32
      %23 = vector.broadcast %cst_7 : f32 to vector<8x128xf32>
      %c0_8 = arith.constant 0 : index
      %c0_9 = arith.constant 0 : index
      %24 = vector.load %arg3[%c0_8, %c0_9] : memref<8x128xf32, #tpu.memory_space<vmem>>, vector<8x128xf32>
      tpu.vector_store %arg3[%c0_8, %c0_9], %23 {strides = array<i32>} : memref<8x128xf32, #tpu.memory_space<vmem>>, vector<8x128xf32>,
    } else {
    }
    %c0 = arith.constant 0 : index
    %c0_1 = arith.constant 0 : index
    %3 = vector.load %arg1[%c0, %c0_1] : memref<8x128xf32, #tpu.memory_space<vmem>>, vector<8x128xf32>
    %c0_2 = arith.constant 0 : index
    %c0_3 = arith.constant 0 : index
    %4 = vector.load %arg2[%c0_2, %c0_3] : memref<8x128xf32, #tpu.memory_space<vmem>>, vector<8x128xf32>
    %cst = arith.constant 0.000000e+00 : f32
    %5 = vector.broadcast %cst : f32 to vector<8x128xf32>
    %6 = arith.maximumf %3, %5 : vector<8x128xf32>
    %7 = arith.mulf %3, %4 : vector<8x128xf32>
    %8 = arith.subf %6, %7 : vector<8x128xf32>
    %9 = math.absf %3 : vector<8x128xf32>
    %cst_4 = arith.constant 0.000000e+00 : f32
    %10 = vector.broadcast %cst_4 : f32 to vector<8x128xf32>
    %11 = arith.subf %10, %9 : vector<8x128xf32>
    %12 = math.exp %11 : vector<8x128xf32>
    %13 = math.log1p %12 : vector<8x128xf32>
    %14 = arith.addf %8, %13 : vector<8x128xf32>
    %c1_i32 = arith.constant 1 : i32
    %15 = arith.addi %arg0, %c1_i32 : i32
    %c8_i32 = arith.constant 8 : i32
    %16 = arith.muli %15, %c8_i32 : i32
    %c7_i32 = arith.constant 7 : i32
    %17 = arith.cmpi sgt, %16, %c7_i32 : i32
    %true = arith.constant true
    %18 = arith.xori %17, %true : i1
    %19 = arith.extui %18 : i1 to i32
    %c0_i32_5 = arith.constant 0 : i32
    %20 = arith.cmpi ne, %19, %c0_i32_5 : i32
    scf.if %20 {
      %c0_7 = arith.constant 0 : index
      %c0_8 = arith.constant 0 : index
      %23 = vector.load %arg3[%c0_7, %c0_8] : memref<8x128xf32, #tpu.memory_space<vmem>>, vector<8x128xf32>
      %24 = vector.shape_cast %14 : vector<8x128xf32> to vector<1x8x128xf32>
      %cst_9 = arith.constant dense<0.000000e+00> : vector<8x128xf32>
      %25 = vector.multi_reduction <add>, %24, %cst_9 [0] : vector<1x8x128xf32> to vector<8x128xf32>
      %26 = arith.addf %23, %25 : vector<8x128xf32>
      %c0_10 = arith.constant 0 : index
      %c0_11 = arith.constant 0 : index
      %27 = vector.load %arg3[%c0_10, %c0_11] : memref<8x128xf32, #tpu.memory_space<vmem>>, vector<8x128xf32>
      tpu.vector_store %arg3[%c0_10, %c0_11], %26 {strides = array<i32>} : memref<8x128xf32, #tpu.memory_space<vmem>>, vector<8x128xf32>,
    } else {
    }
    %21 = arith.extui %17 : i1 to i32
    %c0_i32_6 = arith.constant 0 : i32
    %22 = arith.cmpi ne, %21, %c0_i32_6 : i32
    scf.if %22 {
      %c8_i32_7 = arith.constant 8 : i32
      %23 = arith.muli %arg0, %c8_i32_7 : i32
      %24 = tpu.iota {dimensions = array<i32: 0>} : vector<8x128xi32>
      %25 = vector.broadcast %23 : i32 to vector<8x128xi32>
      %26 = arith.addi %25, %24 : vector<8x128xi32>
      %27 = tpu.iota {dimensions = array<i32: 1>} : vector<8x128xi32>
      %c7_i32_8 = arith.constant 7 : i32
      %28 = vector.broadcast %c7_i32_8 : i32 to vector<8x128xi32>
      %29 = arith.cmpi slt, %26, %28 : vector<8x128xi32>
      %c7_i32_9 = arith.constant 7 : i32
      %30 = vector.broadcast %c7_i32_9 : i32 to vector<8x128xi32>
      %31 = arith.cmpi eq, %26, %30 : vector<8x128xi32>
      %c104_i32 = arith.constant 104 : i32
      %32 = vector.broadcast %c104_i32 : i32 to vector<8x128xi32>
      %33 = arith.cmpi slt, %27, %32 : vector<8x128xi32>
      %34 = arith.andi %31, %33 : vector<8x128xi1>
      %35 = arith.ori %29, %34 : vector<8x128xi1>
      %c0_10 = arith.constant 0 : index
      %c0_11 = arith.constant 0 : index
      %36 = vector.load %arg3[%c0_10, %c0_11] : memref<8x128xf32, #tpu.memory_space<vmem>>, vector<8x128xf32>
      %cst_12 = arith.constant 0.000000e+00 : f32
      %37 = vector.broadcast %cst_12 : f32 to vector<8x128xf32>
      %38 = arith.select %35, %14, %37 : vector<8x128xi1>, vector<8x128xf32>
      %39 = vector.shape_cast %38 : vector<8x128xf32> to vector<1x8x128xf32>
      %cst_13 = arith.constant dense<0.000000e+00> : vector<8x128xf32>
      %40 = vector.multi_reduction <add>, %39, %cst_13 [0] : vector<1x8x128xf32> to vector<8x128xf32>
      %41 = arith.addf %36, %40 : vector<8x128xf32>
      %c0_14 = arith.constant 0 : index
      %c0_15 = arith.constant 0 : index
      %42 = vector.load %arg3[%c0_14, %c0_15] : memref<8x128xf32, #tpu.memory_space<vmem>>, vector<8x128xf32>
      tpu.vector_store %arg3[%c0_14, %c0_15], %41 {strides = array<i32>} : memref<8x128xf32, #tpu.memory_space<vmem>>, vector<8x128xf32>,
    } else {
    }
    return
  }
  func.func @transform_0(%arg0: i32) -> (i32, i32) {
    %c0_i32 = arith.constant 0 : i32
    %c0_i32_0 = arith.constant 0 : i32
    return %arg0, %c0_i32 : i32, i32
  }
  func.func @transform_1(%arg0: i32) -> (i32, i32) {
    %c0_i32 = arith.constant 0 : i32
    %c0_i32_0 = arith.constant 0 : i32
    return %arg0, %c0_i32 : i32, i32
  }
  func.func @transform_2(%arg0: i32) -> (i32, i32) {
    %c0_i32 = arith.constant 0 : i32
    %c0_i32_0 = arith.constant 0 : i32
    %c0_i32_1 = arith.constant 0 : i32
    return %c0_i32, %c0_i32_0 : i32, i32
  }
}

</mosaic_0001>

<bundles_post_ra>
// kernel: tpu_custom_call.1
= control target key start
LH: loop header
LB: loop body
LE: loop exit
PB: predicated region body
PF: predicated region fallthrough
CT: control target
= control target key end

     0   :  { %7 = vsyncpa [#allocation3], 0  ;;  %s241_s0 = inlined_call_operand.hbm [shape: f32[8,128], index: 0, kind: input, shape index: {}]   ;;  %s242_s1 = inlined_call_operand.hbm [shape: f32[8,128], index: 1, kind: input, shape index: {}]   ;;  %s243_s2 = inlined_call_operand.hbm [shape: f32[8,128], index: 2, kind: output, shape index: {}]  }
   0x1   :  { %8 = vsyncpa [#allocation6], 0 }
   0x2   :  { %9 = vsyncpa [#allocation4], 0  ;;  %s187_s9 = smov [#allocation2]   ;;  %s188_s11 = smov [#allocation5]  }
   0x3   :  { %s16_s10 = sshll.u32 %s187_s9, 4  ;;  %s26_s12 = sshll.u32 %s188_s11, 4  ;;  %s17_s10 = int_to_ptr.vmem [resolvable:$true] %s16_s10  ;;  %s27_s12 = int_to_ptr.vmem [resolvable:$true] %s26_s12 }
   0x4   :  { %s115_s15 = scalar_lea.hbm %s241_s0, 128 }
   0x5   :  { %p116_p0 = scmp.ne.s32.totalorder %s241_s0, %s115_s15  ;;  %p119_p1 = scmp.lt.u32.totalorder %s115_s15, %s241_s0 }
   0x7   :  { %p121_p2 = pnand %p119_p1, %p116_p0 }
   0x9   :  { %124 = shalt.err (!%p121_p2)
}
   0xa   :  { %s125_s20 = scalar_lea.vmem %s17_s10, 128  ;;  %p130_p4 = scmp.lt.s32.totalorder %s17_s10, %s17_s10 }
   0xb   :  { %p126_p3 = scmp.ne.s32.totalorder %s17_s10, %s125_s20  ;;  %p131_p5 = scmp.lt.s32.totalorder %s125_s20, %s125_s20 }
   0xd   :  { %p132_p6 = por %p131_p5, %p130_p4 }
   0xf   :  { %p133_p7 = pnand %p132_p6, %p126_p3 }
  0x11   :  { %136 = shalt.err (!%p133_p7)
}
  0x12   :  { %19 = dma.hbm_to_vmem [thread:$0]  %s241_s0, 128, %s17_s10, [#allocation3]  }
  0x13   :  { %s137_s25 = scalar_lea.hbm %s242_s1, 128 }
  0x14   :  { %p138_p8 = scmp.ne.s32.totalorder %s242_s1, %s137_s25  ;;  %p141_p9 = scmp.lt.u32.totalorder %s137_s25, %s242_s1 }
  0x16   :  { %p143_p10 = pnand %p141_p9, %p138_p8 }
  0x18   :  { %146 = shalt.err (!%p143_p10)
}
  0x19   :  { %s147_s30 = scalar_lea.vmem %s27_s12, 128  ;;  %p152_p12 = scmp.lt.s32.totalorder %s27_s12, %s27_s12 }
  0x1a   :  { %p148_p11 = scmp.ne.s32.totalorder %s27_s12, %s147_s30  ;;  %p153_p13 = scmp.lt.s32.totalorder %s147_s30, %s147_s30 }
  0x1c   :  { %p154_p0 = por %p153_p13, %p152_p12 }
  0x1e   :  { %p155_p1 = pnand %p154_p0, %p148_p11 }
  0x20   :  { %158 = shalt.err (!%p155_p1)
}
  0x21   :  { %29 = dma.hbm_to_vmem [thread:$0]  %s242_s1, 128, %s27_s12, [#allocation6]  }
  0x22   :  { %181 = dma.done.wait [#allocation3], 128  }
  0x23   :  { %182 = vsyncadd [#allocation3], 4294967168 }
  0x24   :  { %183 = dma.done.wait [#allocation6], 128  }
  0x25   :  { %184 = vsyncadd [#allocation6], 4294967168  ;;  %v41_v0 = vld [vmem:[#allocation2] sm:$0xff]  ;;  %v75_v6 = vlaneseq  ;;  %v42_v8 = vld [vmem:[#allocation5] sm:$0xff]  ;;  %s189_s1 = smov [#allocation7]  }
  0x26   :  { %v46_v1 = vand.u32 2147483647, %v41_v0  ;;  %v43_v12 = vmax.f32 %v41_v0, 0.0  ;;  %v44_v13 = vmul.f32 %v42_v8, %v41_v0  ;;  %s97_s4 = sshll.u32 %s189_s1, 4  ;;  %s98_s4 = int_to_ptr.vmem [resolvable:$true] %s97_s4 }
  0x27   :  { %v76_v9 = vshrl.u32 %v75_v6, 7  ;;  %v80_v10 = vand.u32 127, %v75_v6  ;;  %s159_s5 = scalar_lea.vmem %s98_s4, 128  ;;  %p164_p3 = scmp.lt.s32.totalorder %s98_s4, %s98_s4 }
  0x28   :  { %v47_v2 = vsub.f32 0.0, %v46_v1  ;;  %v45_v17 = vsub.f32 %v43_v12, %v44_v13  ;;  %p160_p2 = scmp.ne.s32.totalorder %s98_s4, %s159_s5  ;;  %p165_p4 = scmp.lt.s32.totalorder %s159_s5, %s159_s5 }
  0x29   :  { %vm82_vm0 = vcmp.eq.s32.totalorder %v76_v9, 7  ;;  %vm83_vm1 = vcmp.lt.s32.totalorder %v80_v10, 104  ;;  %vm81_vm3 = vcmp.lt.s32.totalorder %v76_v9, 7 }
  0x2a   :  { %v48_v3 = vmul.f32 1.442695, %v47_v2  ;;  %vm84_vm4 = vmand %vm82_vm0, %vm83_vm1  ;;  %p166_p5 = por %p165_p4, %p164_p3 }
  0x2b   :  { %vm85_vm5 = vmor %vm81_vm3, %vm84_vm4 }
  0x2c   :  { %111 = vpow2.f32 %v48_v3  ;;  %p167_p6 = pnand %p166_p5, %p160_p2 }
  0x36   :  { %v112_v4 = vpop.eup %111 }
  0x37   :  { %v50_v5 = vadd.f32 1.0, %v112_v4  ;;  %v53_v7 = vmul.f32 -0.5, %v112_v4  ;;  %v56_v14 = vand.u32 2147483647, %v112_v4 }
  0x39   :  { %113 = vlog2.f32 %v50_v5  ;;  %v54_v11 = vadd.f32 1.0, %v53_v7  ;;  %vm57_vm2 = vcmp.lt.f32.partialorder %v56_v14, 0.0004427343 }
  0x3b   :  { %v55_v15 = vmul.f32 %v112_v4, %v54_v11 }
  0x43   :  { %v114_v16 = vpop.eup %113 }
  0x44   :  { %v52_v18 = vmul.f32 0.6931472, %v114_v16 }
  0x46   :  { %v58_v19 = vsel %vm57_vm2, %v55_v15, %v52_v18 }
  0x47   :  { %v59_v20 = vadd.f32 %v58_v19, %v45_v17 }
  0x49   :  { %v87_v21 = vsel %vm85_vm5, %v59_v20, 0.0 }
  0x4a   :  { %90 = vst [vmem:[#allocation7] sm:$0xff] %v87_v21 }
  0x4b   :  { %170 = shalt.err (!%p167_p6)
}
  0x4c   :  { %s171_s8 = scalar_lea.hbm %s243_s2, 128 }
  0x4d   :  { %p172_p7 = scmp.ne.s32.totalorder %s243_s2, %s171_s8  ;;  %p175_p8 = scmp.lt.u32.totalorder %s171_s8, %s243_s2 }
  0x4f   :  { %p177_p9 = pnand %p175_p8, %p172_p7 }
  0x51   :  { %180 = shalt.err (!%p177_p9)
}
  0x52   :  { %100 = dma.vmem_to_hbm [thread:$0]  %s98_s4, 128, %s243_s2, [#allocation4]  }
  0x53   :  { %185 = dma.done.wait [#allocation4], 128  }
  0x54   :  { %186 = vsyncadd [#allocation4], 4294967168 }
  0x55   :  { %104 = vsyncpa [#allocation3], 1 }
  0x56   :  { %105 = vsyncpa [#allocation6], 1 }
  0x57   :  { %106 = vsyncpa [#allocation4], 1 }

</bundles_post_ra>
